<compile_context>
chip_gen: v7x
topology: tpu7x:2x2x1
jax: 0.10.0
libtpu: 0.0.40
codegen_flags: <defaults>
</compile_context>

<pallas_src>
import functools

import jax
import jax.numpy as jnp
from jax import lax
from jax.experimental import pallas as pl
from jax.experimental.pallas import tpu as pltpu

LN_EPS = 1e-5            # torch.nn.LayerNorm default eps
IN_FEATURES = 4
OUT_FEATURES = 10


def linear_layernorm_kernel(x_ref, p_ref, o_ref):
    # x_ref: (B, IN)
    # p_ref: (IN+3, OUT)  packed params: rows [0:IN]=W^T, [IN]=bias, [IN+1]=gamma, [IN+2]=beta
    # o_ref: (B, OUT)
    x = x_ref[...]
    p = p_ref[...]

    in_features = x.shape[1]          # static (= 4)
    out_features = p.shape[1]         # static (= 10)

    wt = p[0:in_features, :]                        # (IN, OUT)  -- static slices are free
    b = p[in_features:in_features + 1, :]           # (1, OUT)
    gamma = p[in_features + 1:in_features + 2, :]   # (1, OUT)
    beta = p[in_features + 2:in_features + 3, :]    # (1, OUT)

    # ---- Linear: tiny-K contraction on the VPU as unrolled broadcast-MACs,
    #      bias folded into the first term; stays in f32 throughout.
    y = b + x[:, 0:1] * wt[0:1, :]
    for k in range(1, in_features):
        y = y + x[:, k:k + 1] * wt[k:k + 1, :]

    # ---- LayerNorm over the feature axis, PyTorch semantics:
    #      biased variance, eps inside the sqrt, then affine (gamma, beta).
    s = jnp.sum(y, axis=-1, keepdims=True)          # single XLU lane-reduce
    mean = s * (1.0 / out_features)
    centered = y - mean
    var = jnp.sum(centered * centered, axis=-1, keepdims=True) * (1.0 / out_features)
    inv = lax.rsqrt(var + LN_EPS)                   # EUP rsqrt (free slot)
    o_ref[...] = (centered * inv * gamma + beta).astype(o_ref.dtype)


def pack_params(w, b, gamma, beta):
    """Call ONCE at model init. w: (OUT, IN) PyTorch layout; b/gamma/beta: (OUT,).
    Returns a single (IN+3, OUT) f32 array: [W^T ; bias ; gamma ; beta]."""
    out_features, in_features = w.shape
    return jnp.concatenate(
        [
            w.T.astype(jnp.float32),                       # (IN, OUT)
            b.reshape(1, out_features).astype(jnp.float32),
            gamma.reshape(1, out_features).astype(jnp.float32),
            beta.reshape(1, out_features).astype(jnp.float32),
        ],
        axis=0,
    )


@functools.partial(jax.jit, static_argnames=())
def linear_layernorm_forward(x, packed_params):
    """x: (B, IN); packed_params: (IN+3, OUT) from pack_params()."""
    batch, in_features = x.shape
    out_features = packed_params.shape[1]

    vmem = pl.BlockSpec(memory_space=pltpu.MemorySpace.VMEM)
    cost = pl.CostEstimate(
        flops=2 * batch * in_features * out_features + 8 * batch * out_features,
        transcendentals=batch,
        bytes_accessed=4 * (batch * in_features
                            + (in_features + 3) * out_features
                            + batch * out_features),
    )
    return pl.pallas_call(
        linear_layernorm_kernel,
        out_shape=jax.ShapeDtypeStruct((batch, out_features), x.dtype),
        in_specs=[vmem, vmem],
        out_specs=vmem,
        cost_estimate=cost,
    )(x, packed_params)


if __name__ == "__main__":
    key = jax.random.PRNGKey(0)
    k_x, k_w, k_b = jax.random.split(key, 3)

    BATCH = 8

    # Mimic torch.nn.Linear init: uniform(-1/sqrt(in), 1/sqrt(in))
    bound = 1.0 / jnp.sqrt(float(IN_FEATURES))
    w = jax.random.uniform(k_w, (OUT_FEATURES, IN_FEATURES),
                           minval=-bound, maxval=bound, dtype=jnp.float32)
    b = jax.random.uniform(k_b, (OUT_FEATURES,),
                           minval=-bound, maxval=bound, dtype=jnp.float32)
    # torch.nn.LayerNorm default init: weight=1, bias=0
    gamma = jnp.ones((OUT_FEATURES,), dtype=jnp.float32)
    beta = jnp.zeros((OUT_FEATURES,), dtype=jnp.float32)

    x = jax.random.normal(k_x, (BATCH, IN_FEATURES), dtype=jnp.float32)

    # Parameter packing happens ONCE here (model-init time), not per forward call.
    packed = jax.block_until_ready(pack_params(w, b, gamma, beta))

    out = linear_layernorm_forward(x, packed)
    out = jax.block_until_ready(out)

    # Reference: plain JAX Linear + LayerNorm (biased variance, eps=1e-5)
    y_ref = x @ w.T + b
    mean_ref = jnp.mean(y_ref, axis=-1, keepdims=True)
    var_ref = jnp.mean((y_ref - mean_ref) ** 2, axis=-1, keepdims=True)
    ref = (y_ref - mean_ref) / jnp.sqrt(var_ref + LN_EPS) * gamma + beta

    assert out.shape == (BATCH, OUT_FEATURES)
    assert jnp.allclose(out, ref, atol=1e-4, rtol=1e-4)

    print("KERNEL_OK")
</pallas_src>

<mosaic_0001>
module attributes {stable_mosaic.version = 11 : i64} {
  func.func @linear_layernorm_kernel(%arg0: memref<8x4xf32, #tpu.memory_space<vmem>>, %arg1: memref<7x10xf32, #tpu.memory_space<vmem>>, %arg2: memref<8x10xf32, #tpu.memory_space<vmem>>) attributes {dimension_semantics = [], scalar_prefetch = 0 : i64, scratch_operands = 0 : i64, tpu.core_type = #tpu.core_type<tc>} {
    %c0 = arith.constant 0 : index
    %c0_0 = arith.constant 0 : index
    %0 = vector.load %arg0[%c0, %c0_0] : memref<8x4xf32, #tpu.memory_space<vmem>>, vector<8x4xf32>
    %c0_1 = arith.constant 0 : index
    %c0_2 = arith.constant 0 : index
    %1 = vector.load %arg1[%c0_1, %c0_2] : memref<7x10xf32, #tpu.memory_space<vmem>>, vector<7x10xf32>
    %2 = vector.extract_strided_slice %1 {offsets = [0, 0], sizes = [4, 10], strides = [1, 1]} : vector<7x10xf32> to vector<4x10xf32>
    %3 = vector.extract_strided_slice %1 {offsets = [4, 0], sizes = [1, 10], strides = [1, 1]} : vector<7x10xf32> to vector<1x10xf32>
    %4 = vector.extract_strided_slice %1 {offsets = [5, 0], sizes = [1, 10], strides = [1, 1]} : vector<7x10xf32> to vector<1x10xf32>
    %5 = vector.extract_strided_slice %1 {offsets = [6, 0], sizes = [1, 10], strides = [1, 1]} : vector<7x10xf32> to vector<1x10xf32>
    %6 = vector.extract_strided_slice %0 {offsets = [0, 0], sizes = [8, 1], strides = [1, 1]} : vector<8x4xf32> to vector<8x1xf32>
    %7 = vector.extract_strided_slice %2 {offsets = [0, 0], sizes = [1, 10], strides = [1, 1]} : vector<4x10xf32> to vector<1x10xf32>
    %8 = vector.broadcast %6 : vector<8x1xf32> to vector<8x10xf32>
    %9 = vector.broadcast %7 : vector<1x10xf32> to vector<8x10xf32>
    %10 = arith.mulf %8, %9 : vector<8x10xf32>
    %11 = vector.broadcast %3 : vector<1x10xf32> to vector<8x10xf32>
    %12 = arith.addf %11, %10 : vector<8x10xf32>
    %13 = vector.extract_strided_slice %0 {offsets = [0, 1], sizes = [8, 1], strides = [1, 1]} : vector<8x4xf32> to vector<8x1xf32>
    %14 = vector.extract_strided_slice %2 {offsets = [1, 0], sizes = [1, 10], strides = [1, 1]} : vector<4x10xf32> to vector<1x10xf32>
    %15 = vector.broadcast %13 : vector<8x1xf32> to vector<8x10xf32>
    %16 = vector.broadcast %14 : vector<1x10xf32> to vector<8x10xf32>
    %17 = arith.mulf %15, %16 : vector<8x10xf32>
    %18 = arith.addf %12, %17 : vector<8x10xf32>
    %19 = vector.extract_strided_slice %0 {offsets = [0, 2], sizes = [8, 1], strides = [1, 1]} : vector<8x4xf32> to vector<8x1xf32>
    %20 = vector.extract_strided_slice %2 {offsets = [2, 0], sizes = [1, 10], strides = [1, 1]} : vector<4x10xf32> to vector<1x10xf32>
    %21 = vector.broadcast %19 : vector<8x1xf32> to vector<8x10xf32>
    %22 = vector.broadcast %20 : vector<1x10xf32> to vector<8x10xf32>
    %23 = arith.mulf %21, %22 : vector<8x10xf32>
    %24 = arith.addf %18, %23 : vector<8x10xf32>
    %25 = vector.extract_strided_slice %0 {offsets = [0, 3], sizes = [8, 1], strides = [1, 1]} : vector<8x4xf32> to vector<8x1xf32>
    %26 = vector.extract_strided_slice %2 {offsets = [3, 0], sizes = [1, 10], strides = [1, 1]} : vector<4x10xf32> to vector<1x10xf32>
    %27 = vector.broadcast %25 : vector<8x1xf32> to vector<8x10xf32>
    %28 = vector.broadcast %26 : vector<1x10xf32> to vector<8x10xf32>
    %29 = arith.mulf %27, %28 : vector<8x10xf32>
    %30 = arith.addf %24, %29 : vector<8x10xf32>
    %cst = arith.constant dense<0.000000e+00> : vector<8xf32>
    %31 = vector.multi_reduction <add>, %30, %cst [1] : vector<8x10xf32> to vector<8xf32>
    %32 = vector.shape_cast %31 : vector<8xf32> to vector<8x1xf32>
    %cst_3 = arith.constant 1.000000e-01 : f32
    %33 = vector.broadcast %cst_3 : f32 to vector<8x1xf32>
    %34 = arith.mulf %32, %33 : vector<8x1xf32>
    %35 = vector.broadcast %34 : vector<8x1xf32> to vector<8x10xf32>
    %36 = arith.subf %30, %35 : vector<8x10xf32>
    %37 = arith.mulf %36, %36 : vector<8x10xf32>
    %cst_4 = arith.constant dense<0.000000e+00> : vector<8xf32>
    %38 = vector.multi_reduction <add>, %37, %cst_4 [1] : vector<8x10xf32> to vector<8xf32>
    %39 = vector.shape_cast %38 : vector<8xf32> to vector<8x1xf32>
    %cst_5 = arith.constant 1.000000e-01 : f32
    %40 = vector.broadcast %cst_5 : f32 to vector<8x1xf32>
    %41 = arith.mulf %39, %40 : vector<8x1xf32>
    %cst_6 = arith.constant 9.99999974E-6 : f32
    %42 = vector.broadcast %cst_6 : f32 to vector<8x1xf32>
    %43 = arith.addf %41, %42 : vector<8x1xf32>
    %44 = math.rsqrt %43 : vector<8x1xf32>
    %45 = vector.broadcast %44 : vector<8x1xf32> to vector<8x10xf32>
    %46 = arith.mulf %36, %45 : vector<8x10xf32>
    %47 = vector.broadcast %4 : vector<1x10xf32> to vector<8x10xf32>
    %48 = arith.mulf %46, %47 : vector<8x10xf32>
    %49 = vector.broadcast %5 : vector<1x10xf32> to vector<8x10xf32>
    %50 = arith.addf %48, %49 : vector<8x10xf32>
    %c0_7 = arith.constant 0 : index
    %c0_8 = arith.constant 0 : index
    %51 = vector.load %arg2[%c0_7, %c0_8] : memref<8x10xf32, #tpu.memory_space<vmem>>, vector<8x10xf32>
    tpu.vector_store %arg2[%c0_7, %c0_8], %50 {strides = array<i32>} : memref<8x10xf32, #tpu.memory_space<vmem>>, vector<8x10xf32>,
    return
  }
}

</mosaic_0001>

<bundles_post_ra>
// kernel: linear_layernorm_forward.1
= control target key start
LH: loop header
LB: loop body
LE: loop exit
PB: predicated region body
PF: predicated region fallthrough
CT: control target
= control target key end

     0   :  { %v134_v1 = vmov 0   ;;  %v135_v2 = vmov 2   ;;  %s175_s0 = inlined_call_operand.vmem [shape: f32[8,4], index: 0, kind: input, shape index: {}]   ;;  %s176_s1 = inlined_call_operand.vmem [shape: f32[7,10], index: 1, kind: input, shape index: {}]   ;;  %s177_s2 = inlined_call_operand.hbm [shape: f32[8,10], index: 2, kind: output, shape index: {}]  }
   0x1   :  { %v12_v0 = vld [vmem:[%s175_s0] sm:$0xff]  ;;  %103 = vset.pattern.permute.xlu0 %v134_v1  ;;  %105 = vset.pattern.permute.xlu1 %v135_v2 }
   0x2   :  { %7 = vsyncpa [#allocation3], 0  ;;  %16 = vperm.xlu0 %103, %v12_v0   ;;  %40 = vperm.xlu1 %105, %v12_v0   ;;  %v136_v3 = vmov 1   ;;  %v137_v4 = vmov 3   ;;  %v19_v5 = vlaneseq  ;;  %v13_v8 = vld [vmem:[%s176_s1] sm:$0x7f] }
   0x3   :  { %vm59_vm0 = vcmask 80896   ;;  %s138_s0 = smov [#allocation2]  }
   0x4   :  { %v20_v6 = vshrl.u32 %v19_v5, 7  ;;  %s90_s1 = sshll.u32 %s138_s0, 4  ;;  %s91_s1 = int_to_ptr.vmem [resolvable:$true] %s90_s1 }
   0x5   :  { %s110_s13 = scalar_lea.vmem %s91_s1, 128  ;;  %p115_p1 = scmp.lt.s32.totalorder %s91_s1, %s91_s1 }
   0x6   :  { %104 = vset.pattern.permute.xlu0 %v136_v3  ;;  %106 = vset.pattern.permute.xlu1 %v137_v4  ;;  %v21_v7 = vsub.s32 0, %v20_v6  ;;  %v26_v10 = vsub.s32 4, %v20_v6  ;;  %v35_v11 = vsub.s32 1, %v20_v6  ;;  %v45_v13 = vsub.s32 2, %v20_v6  ;;  %p111_p0 = scmp.ne.s32.totalorder %s91_s1, %s110_s13  ;;  %p116_p2 = scmp.lt.s32.totalorder %s110_s13, %s110_s13 }
   0x7   :  { %30 = vperm.xlu0 %104, %v12_v0   ;;  %50 = vperm.xlu1 %106, %v12_v0   ;;  %v55_v15 = vsub.s32 3, %v20_v6  ;;  %v75_v39 = vsub.s32 5, %v20_v6  ;;  %v80_v40 = vsub.s32 6, %v20_v6 }
   0x8   :  { %v22_v9 = vrot.slane %v13_v8, %v21_v7  ;;  %v27_v16 = vrot.slane %v13_v8, %v26_v10  ;;  %v36_v18 = vrot.slane %v13_v8, %v35_v11  ;;  %v46_v19 = vrot.slane %v13_v8, %v45_v13  ;;  %p117_p3 = por %p116_p2, %p115_p1 }
   0x9   :  { %v56_v20 = vrot.slane %v13_v8, %v55_v15  ;;  %v76_v41 = vrot.slane %v13_v8, %v75_v39  ;;  %v81_v44 = vrot.slane %v13_v8, %v80_v40 }
   0xa   :  { %p118_p4 = pnand %p117_p3, %p111_p0 }
   0xb   :  { %107 = vset.pattern.permute.xlu0 %v137_v4 }
  0x81   :  { %v17_v12 = vpop.permute.xlu0 %16  ;;  %v41_v14 = vpop.permute.xlu1 %40 }
  0x82   :  { %v23_v17 = vmul.f32 %v22_v9, %v17_v12  ;;  %v47_v25 = vmul.f32 %v46_v19, %v41_v14 }
  0x84   :  { %v28_v23 = vadd.f32 %v27_v16, %v23_v17 }
  0x86   :  { %v31_v21 = vpop.permute.xlu0 %30  ;;  %v51_v22 = vpop.permute.xlu1 %50 }
  0x87   :  { %v37_v24 = vmul.f32 %v36_v18, %v31_v21  ;;  %v57_v27 = vmul.f32 %v56_v20, %v51_v22 }
  0x89   :  { %v38_v26 = vadd.f32 %v37_v24, %v28_v23 }
  0x8b   :  { %v48_v28 = vadd.f32 %v47_v25, %v38_v26 }
  0x8d   :  { %v58_v29 = vadd.f32 %v57_v27, %v48_v28 }
  0x8f   :  { %v60_v30 = vsel %vm59_vm0, %v58_v29, 0.0 }
  0x90   :  { %61 = vadd.xlane.f32.xlu1 %v60_v30 }
 0x11d   :  { %v62_v31 = vpop.xlane.xlu1 %61 }
 0x11e   :  { %v63_v32 = vmul.f32 0.1, %v62_v31 }
 0x120   :  { %v64_v33 = vsub.f32 %v58_v29, %v63_v32 }
 0x122   :  { %v65_v34 = vmul.f32 %v64_v33, %v64_v33 }
 0x124   :  { %v66_v35 = vsel %vm59_vm0, %v65_v34, 0.0 }
 0x125   :  { %67 = vadd.xlane.f32.xlu0 %v66_v35 }
 0x1b2   :  { %v68_v36 = vpop.xlane.xlu0 %67 }
 0x1b3   :  { %v69_v37 = vmul.f32 0.1, %v68_v36 }
 0x1b5   :  { %v70_v38 = vadd.f32 1e-05, %v69_v37 }
 0x1b7   :  { %108 = vrsqrt.f32 %v70_v38 }
 0x1c1   :  { %v109_v42 = vpop.eup %108 }
 0x1c2   :  { %v72_v43 = vmul.f32 %v109_v42, %v64_v33 }
 0x1c4   :  { %v77_v45 = vmul.f32 %v76_v41, %v72_v43 }
 0x1c6   :  { %v82_v46 = vadd.f32 %v81_v44, %v77_v45 }
 0x1c8   :  { %83 = vst.msk [vmem:[#allocation2] sm:$0xff] %vm59_vm0, %v82_v46 }
 0x1c9   :  { %121 = shalt.err (!%p118_p4)
}
 0x1ca   :  { %s122_s16 = scalar_lea.hbm %s177_s2, 128 }
 0x1cb   :  { %p123_p5 = scmp.ne.s32.totalorder %s177_s2, %s122_s16  ;;  %p126_p6 = scmp.lt.u32.totalorder %s122_s16, %s177_s2 }
 0x1cd   :  { %p128_p7 = pnand %p126_p6, %p123_p5 }
 0x1cf   :  { %131 = shalt.err (!%p128_p7)
}
 0x1d0   :  { %93 = dma.vmem_to_hbm [thread:$0]  %s91_s1, 128, %s177_s2, [#allocation3]  }
 0x1d1   :  { %132 = dma.done.wait [#allocation3], 128  }
 0x1d2   :  { %133 = vsyncadd [#allocation3], 4294967168 }
 0x1d3   :  { %97 = vsyncpa [#allocation3], 1 }

</bundles_post_ra>
